<compile_context>
chip_gen: v6e
topology: v6e:2x2x1
jax: 0.10.0
libtpu: 0.0.40
codegen_flags: <defaults>
</compile_context>

<pallas_src>
import functools

import jax
import jax.numpy as jnp
from jax.experimental import pallas as pl
from jax.experimental.pallas import tpu as pltpu

BN_EPS = 1e-5


def _round_up(x, m):
    return (x + m - 1) // m * m


@functools.lru_cache(maxsize=None)
def _vmem_capacity_bytes():
    try:
        return int(pltpu.get_tpu_info().vmem_capacity_bytes)
    except Exception:
        return 64 * 1024 * 1024  # conservative fallback: v7x per-TC VMEM


# ---------------------------------------------------------------------------
# Pass 1: conv-as-matmul (MXU), K-tiled with an f32 VMEM accumulator, plus
# per-M-tile partial BatchNorm statistics emitted on the last K step.
# ---------------------------------------------------------------------------
def _conv_stats_kernel(p_ref, w_ref, y_ref, s_ref, acc_ref):
    # p_ref  : (TM, TK)    bf16 im2col patch tile (input resolution)
    # w_ref  : (TK, C4p)   bf16 combined 4-phase conv weight tile
    # y_ref  : (TM, C4p)   bf16 conv output tile (written on last K step)
    # s_ref  : (1, 2, C4p) f32  per-M-tile partial [sum, sum_of_squares]
    # acc_ref: (TM, C4p)   f32  accumulator scratch (lives across the K axis)
    k = pl.program_id(1)

    @pl.when(k == 0)
    def _():
        acc_ref[...] = jnp.zeros_like(acc_ref)

    acc_ref[...] += jnp.dot(p_ref[...], w_ref[...],
                            preferred_element_type=jnp.float32)

    @pl.when(k == pl.num_programs(1) - 1)
    def _():
        y = acc_ref[...]
        y_ref[...] = y.astype(y_ref.dtype)
        # Direct row writes (no concatenate -> no extra VMEM relayout).
        s_ref[0, 0:1, :] = jnp.sum(y, axis=0, keepdims=True)
        s_ref[0, 1:2, :] = jnp.sum(y * y, axis=0, keepdims=True)


# ---------------------------------------------------------------------------
# Pass 2: fused BatchNorm (one per-channel scale/shift) + ReLU, in place over
# the bf16 conv intermediate (its HBM buffer is aliased as the output).
# ---------------------------------------------------------------------------
def _bn_relu_kernel(y_ref, ss_ref, o_ref):
    # y_ref : (TM, C4p) bf16 ; ss_ref : (2, C4p) f32 ; o_ref : (TM, C4p) bf16
    y = y_ref[...].astype(jnp.float32)
    scale = ss_ref[0:1, :]
    shift = ss_ref[1:2, :]
    o_ref[...] = jnp.maximum(y * scale + shift, 0.0).astype(o_ref.dtype)


def up_conv_forward(x_nchw, conv_w, conv_b, bn_gamma, bn_beta, *,
                    tile_m=None, tile_k=512, compute_dtype=jnp.bfloat16):
    """Pallas implementation of up_conv.forward.  x_nchw: (N, Cin, H, W)."""
    del conv_b  # Exactly cancelled by train-mode BatchNorm mean subtraction.

    N, Cin, H, W = x_nchw.shape
    Cout = conv_w.shape[0]
    Hu, Wu = 2 * H, 2 * W

    # ---- glue (plain JAX, all at INPUT resolution; no upsampled tensor) ----
    x = jnp.transpose(x_nchw, (0, 2, 3, 1))                      # (N,H,W,Cin)
    xpad = jnp.pad(x, ((0, 0), (1, 1), (1, 1), (0, 0)))          # (N,H+2,W+2,Cin)

    # TODO(synk): move im2col into the kernel (halo'd row-band DMA + 9 shifted
    # (TM,Cin)x(Cin,C4p) matmuls) to avoid writing/re-reading the 9x patch
    # matrix in HBM.
    cols = []
    for a in range(3):
        for b in range(3):
            cols.append(xpad[:, a:a + H, b:b + W, :])
    M = N * H * W
    K = 9 * Cin
    patches = jnp.concatenate(cols, axis=-1).reshape(M, K)

    # Combined 4-phase weights: nearest-x2 upsample + 3x3 conv == one 3x3 conv
    # at input resolution producing 4*Cout channels (one per 2x2 sub-pixel).
    w_t = jnp.transpose(conv_w, (2, 3, 1, 0)).astype(jnp.float32)  # (3,3,Cin,Cout)
    rmap = ((0, 1, 1), (1, 1, 2))
    w_comb = jnp.zeros((3, 3, Cin, 2, 2, Cout), jnp.float32)
    for py in range(2):
        for px in range(2):
            for dy in range(3):
                for dx in range(3):
                    w_comb = w_comb.at[rmap[py][dy], rmap[px][dx], :, py, px, :].add(
                        w_t[dy, dx])
    C4 = 4 * Cout
    w_comb = w_comb.reshape(K, C4)

    # ---- tiling derived from the VMEM budget of the current generation ----
    vmem_cap = _vmem_capacity_bytes()
    budget = max(min(vmem_cap - (16 << 20), 96 << 20), 24 << 20)
    C4p = _round_up(C4, 128)                        # keep output lane-dense

    if K <= max(tile_k, 128):
        Kp = _round_up(K, 16)                       # small K: no 128 lane pad
        TK, nk = Kp, 1
    else:
        TK = _round_up(tile_k, 128)
        Kp = _round_up(K, TK)
        nk = Kp // TK

    def _pass1_bytes(tm):
        return (2 * tm * TK * 2                      # patch tiles (bf16, x2 buf)
                + 2 * TK * C4p * 2                   # weight tiles
                + 2 * tm * C4p * 2                   # bf16 y output tiles
                + 2 * 2 * C4p * 4                    # stats tiles
                + tm * C4p * 4)                      # f32 accumulator scratch

    if tile_m is None:                               # bigger tiles on 128 MiB gens
        tile_m = 1024 if budget >= (64 << 20) else 512
    TM = _round_up(min(tile_m, M), 16)               # bf16 sublane packing
    while _pass1_bytes(TM) > budget and TM > 16:
        TM = max(16, _round_up(TM // 2, 16))
    M_pad = _round_up(M, TM)
    num_m = M_pad // TM

    patches = jnp.pad(patches, ((0, M_pad - M), (0, Kp - K))).astype(compute_dtype)
    w_comb = jnp.pad(w_comb, ((0, Kp - K), (0, C4p - C4))).astype(compute_dtype)

    cparams = pltpu.CompilerParams(
        dimension_semantics=("parallel", "arbitrary"),
        vmem_limit_bytes=int(budget))

    # ---- pass 1: conv + partial statistics (M parallel, K reduction) ----
    # TODO(synk): for very large 4*Cout (>= ~2048) add a parallel C4p grid axis
    # so the weight slab shrinks further on v7x.
    y, stats = pl.pallas_call(
        _conv_stats_kernel,
        out_shape=(
            jax.ShapeDtypeStruct((M_pad, C4p), compute_dtype),
            jax.ShapeDtypeStruct((num_m, 2, C4p), jnp.float32),
        ),
        grid=(num_m, nk),
        in_specs=[
            pl.BlockSpec((TM, TK), lambda i, k: (i, k)),
            pl.BlockSpec((TK, C4p), lambda i, k: (k, 0)),
        ],
        out_specs=(
            pl.BlockSpec((TM, C4p), lambda i, k: (i, 0)),
            pl.BlockSpec((1, 2, C4p), lambda i, k: (i, 0, 0)),
        ),
        scratch_shapes=[pltpu.VMEM((TM, C4p), jnp.float32)],
        compiler_params=cparams,
    )(patches, w_comb)

    # ---- tiny XLA reduction: fold BN into one per-channel scale/shift ----
    sums = jnp.sum(stats, axis=0)                          # (2, C4p)
    s1 = jnp.sum(sums[0, :C4].reshape(4, Cout), axis=0)    # pool the 4 phases
    s2 = jnp.sum(sums[1, :C4].reshape(4, Cout), axis=0)
    count = float(4 * M)                                   # == N * Hu * Wu
    mean = s1 / count
    # TODO(synk): E[y^2]-mean^2 in f32 can cancel for large |mean|/std ratios;
    # switch to per-tile-centered partial sums if activations develop a DC offset.
    var = jnp.maximum(s2 / count - mean * mean, 0.0)       # biased var (PyTorch)
    scale_c = bn_gamma.astype(jnp.float32) * jax.lax.rsqrt(var + BN_EPS)
    shift_c = bn_beta.astype(jnp.float32) - mean * scale_c
    scale = jnp.pad(jnp.tile(scale_c, 4), (0, C4p - C4))
    shift = jnp.pad(jnp.tile(shift_c, 4), (0, C4p - C4))
    scale_shift = jnp.stack([scale, shift], axis=0)        # (2, C4p)

    # ---- pass 2: normalize + ReLU, writing in place over the bf16 y ----
    out_flat = pl.pallas_call(
        _bn_relu_kernel,
        out_shape=jax.ShapeDtypeStruct((M_pad, C4p), compute_dtype),
        grid=(num_m,),
        in_specs=[
            pl.BlockSpec((TM, C4p), lambda i: (i, 0)),
            pl.BlockSpec((2, C4p), lambda i: (0, 0)),
        ],
        out_specs=pl.BlockSpec((TM, C4p), lambda i: (i, 0)),
        input_output_aliases={0: 0},
        compiler_params=pltpu.CompilerParams(
            dimension_semantics=("parallel",),
            vmem_limit_bytes=int(budget)),
    )(y, scale_shift)

    # ---- epilogue: one fused transpose back to NCHW, interleaving phases ----
    # TODO(synk): fold this de-interleave into pass-2's out_spec (or emit NHWC)
    # to drop one more full HBM pass when the consumer layout allows it.
    out = out_flat[:M, :C4].reshape(N, H, W, 2, 2, Cout)   # n,h,w,py,px,c
    out = jnp.transpose(out, (0, 5, 1, 3, 2, 4))           # n,c,h,py,w,px
    return out.reshape(N, Cout, Hu, Wu).astype(jnp.float32)


def _reference(x_nchw, conv_w, conv_b, bn_gamma, bn_beta):
    """Pure-JAX f32 reference (NCHW conv) for a correctness sanity check."""
    x = jnp.repeat(jnp.repeat(x_nchw, 2, axis=2), 2, axis=3)
    y = jax.lax.conv_general_dilated(
        x, conv_w, window_strides=(1, 1), padding=((1, 1), (1, 1)),
        dimension_numbers=("NCHW", "OIHW", "NCHW"),
        precision=jax.lax.Precision.HIGHEST)
    y = y + conv_b[None, :, None, None]
    mean = jnp.mean(y, axis=(0, 2, 3), keepdims=True)
    var = jnp.mean(jnp.square(y - mean), axis=(0, 2, 3), keepdims=True)
    y = (y - mean) * jax.lax.rsqrt(var + BN_EPS)
    y = y * bn_gamma[None, :, None, None] + bn_beta[None, :, None, None]
    return jnp.maximum(y, 0.0)


if __name__ == "__main__":
    key = jax.random.PRNGKey(0)
    k_x, k_w, k_b, k_x2, k_w2, k_b2 = jax.random.split(key, 6)

    fwd = jax.jit(up_conv_forward,
                  static_argnames=("tile_m", "tile_k", "compute_dtype"))

    # Config 1: small module-consistent shapes; tile_m=128 -> 4 M tiles.
    N, Cin, H, W, Cout = 2, 4, 16, 16, 8
    x = jax.random.normal(k_x, (N, Cin, H, W), dtype=jnp.float32)
    conv_w = jax.random.normal(k_w, (Cout, Cin, 3, 3), dtype=jnp.float32) * 0.1
    conv_b = jax.random.normal(k_b, (Cout,), dtype=jnp.float32) * 0.1
    bn_gamma = jnp.ones((Cout,), dtype=jnp.float32)    # PyTorch BN defaults
    bn_beta = jnp.zeros((Cout,), dtype=jnp.float32)
    out = jax.block_until_ready(
        fwd(x, conv_w, conv_b, bn_gamma, bn_beta, tile_m=128))
    ref = _reference(x, conv_w, conv_b, bn_gamma, bn_beta)
    assert out.shape == (N, Cout, 2 * H, 2 * W), out.shape
    err = float(jnp.max(jnp.abs(out - ref)))
    assert jnp.allclose(out, ref, atol=5e-2, rtol=5e-2), err

    # Config 2: more channels + tile_k=128 so the K-reduction grid axis
    # (nk=3) and the f32 accumulator path are exercised too.
    N2, Cin2, H2, W2, Cout2 = 1, 32, 8, 8, 16
    x2 = jax.random.normal(k_x2, (N2, Cin2, H2, W2), dtype=jnp.float32)
    conv_w2 = jax.random.normal(k_w2, (Cout2, Cin2, 3, 3), dtype=jnp.float32) * 0.05
    conv_b2 = jax.random.normal(k_b2, (Cout2,), dtype=jnp.float32) * 0.1
    bn_gamma2 = jnp.ones((Cout2,), dtype=jnp.float32)
    bn_beta2 = jnp.zeros((Cout2,), dtype=jnp.float32)
    out2 = jax.block_until_ready(
        fwd(x2, conv_w2, conv_b2, bn_gamma2, bn_beta2, tile_m=64, tile_k=128))
    ref2 = _reference(x2, conv_w2, conv_b2, bn_gamma2, bn_beta2)
    err2 = float(jnp.max(jnp.abs(out2 - ref2)))
    assert out2.shape == (N2, Cout2, 2 * H2, 2 * W2), out2.shape
    assert jnp.allclose(out2, ref2, atol=5e-2, rtol=5e-2), err2

    print("KERNEL_OK")
</pallas_src>

<mosaic_0001>
module attributes {stable_mosaic.version = 11 : i64} {
  func.func @_conv_stats_kernel(%arg0: i32, %arg1: i32, %arg2: memref<128x48xbf16, #tpu.memory_space<vmem>>, %arg3: memref<48x128xbf16, #tpu.memory_space<vmem>>, %arg4: memref<128x128xbf16, #tpu.memory_space<vmem>>, %arg5: memref<1x2x128xf32, #tpu.memory_space<vmem>>, %arg6: memref<128x128xf32, #tpu.memory_space<vmem>>) attributes {dimension_semantics = [#tpu.dimension_semantics<parallel>, #tpu.dimension_semantics<arbitrary>], iteration_bounds = array<i64: 4, 1>, scalar_prefetch = 0 : i64, scratch_operands = 1 : i64, tpu.core_type = #tpu.core_type<tc>, window_params = [{transform_indices = @transform_0, window_bounds = array<i64: 128, 48>}, {transform_indices = @transform_1, window_bounds = array<i64: 48, 128>}, {transform_indices = @transform_2, window_bounds = array<i64: 128, 128>}, {transform_indices = @transform_3, window_bounds = array<i64: 1, 2, 128>}]} {
    %c0_i32 = arith.constant 0 : i32
    %0 = arith.cmpi eq, %arg1, %c0_i32 : i32
    %1 = arith.extui %0 : i1 to i32
    %c0_i32_0 = arith.constant 0 : i32
    %2 = arith.cmpi ne, %1, %c0_i32_0 : i32
    scf.if %2 {
      %cst_10 = arith.constant 0.000000e+00 : f32
      %12 = vector.broadcast %cst_10 : f32 to vector<128x128xf32>
      %c0_11 = arith.constant 0 : index
      %c0_12 = arith.constant 0 : index
      %13 = vector.load %arg6[%c0_11, %c0_12] : memref<128x128xf32, #tpu.memory_space<vmem>>, vector<128x128xf32>
      tpu.vector_store %arg6[%c0_11, %c0_12], %12 {strides = array<i32>} : memref<128x128xf32, #tpu.memory_space<vmem>>, vector<128x128xf32>,
    } else {
    }
    %c0 = arith.constant 0 : index
    %c0_1 = arith.constant 0 : index
    %3 = vector.load %arg6[%c0, %c0_1] : memref<128x128xf32, #tpu.memory_space<vmem>>, vector<128x128xf32>
    %c0_2 = arith.constant 0 : index
    %c0_3 = arith.constant 0 : index
    %4 = vector.load %arg2[%c0_2, %c0_3] : memref<128x48xbf16, #tpu.memory_space<vmem>>, vector<128x48xbf16>
    %c0_4 = arith.constant 0 : index
    %c0_5 = arith.constant 0 : index
    %5 = vector.load %arg3[%c0_4, %c0_5] : memref<48x128xbf16, #tpu.memory_space<vmem>>, vector<48x128xbf16>
    %cst = arith.constant dense<0.000000e+00> : vector<128x128xf32>
    %6 = tpu.matmul %4, %5, %cst {dimension_numbers = #tpu.dot_dimension_numbers<[1], [0], [0], [1], [0, 0, 1, 1], [], []>} : vector<128x48xbf16>, vector<48x128xbf16>, vector<128x128xf32> -> vector<128x128xf32>
    %7 = arith.addf %3, %6 : vector<128x128xf32>
    %c0_6 = arith.constant 0 : index
    %c0_7 = arith.constant 0 : index
    %8 = vector.load %arg6[%c0_6, %c0_7] : memref<128x128xf32, #tpu.memory_space<vmem>>, vector<128x128xf32>
    tpu.vector_store %arg6[%c0_6, %c0_7], %7 {strides = array<i32>} : memref<128x128xf32, #tpu.memory_space<vmem>>, vector<128x128xf32>,
    %c0_i32_8 = arith.constant 0 : i32
    %9 = arith.cmpi eq, %arg1, %c0_i32_8 : i32
    %10 = arith.extui %9 : i1 to i32
    %c0_i32_9 = arith.constant 0 : i32
    %11 = arith.cmpi ne, %10, %c0_i32_9 : i32
    scf.if %11 {
      %c0_10 = arith.constant 0 : index
      %c0_11 = arith.constant 0 : index
      %12 = vector.load %arg6[%c0_10, %c0_11] : memref<128x128xf32, #tpu.memory_space<vmem>>, vector<128x128xf32>
      %13 = arith.truncf %12 : vector<128x128xf32> to vector<128x128xbf16>
      %c0_12 = arith.constant 0 : index
      %c0_13 = arith.constant 0 : index
      %14 = vector.load %arg4[%c0_12, %c0_13] : memref<128x128xbf16, #tpu.memory_space<vmem>>, vector<128x128xbf16>
      tpu.vector_store %arg4[%c0_12, %c0_13], %13 {strides = array<i32>} : memref<128x128xbf16, #tpu.memory_space<vmem>>, vector<128x128xbf16>,
      %cst_14 = arith.constant dense<0.000000e+00> : vector<128xf32>
      %15 = vector.multi_reduction <add>, %12, %cst_14 [0] : vector<128x128xf32> to vector<128xf32>
      %16 = vector.shape_cast %15 : vector<128xf32> to vector<1x128xf32>
      %c0_15 = arith.constant 0 : index
      %c0_16 = arith.constant 0 : index
      %c0_17 = arith.constant 0 : index
      %17 = vector.load %arg5[%c0_15, %c0_16, %c0_17] : memref<1x2x128xf32, #tpu.memory_space<vmem>>, vector<1x1x128xf32>
      %18 = vector.shape_cast %17 : vector<1x1x128xf32> to vector<1x128xf32>
      %19 = vector.shape_cast %16 : vector<1x128xf32> to vector<1x1x128xf32>
      tpu.vector_store %arg5[%c0_15, %c0_16, %c0_17], %19 {strides = array<i32>} : memref<1x2x128xf32, #tpu.memory_space<vmem>>, vector<1x1x128xf32>,
      %20 = arith.mulf %12, %12 : vector<128x128xf32>
      %cst_18 = arith.constant dense<0.000000e+00> : vector<128xf32>
      %21 = vector.multi_reduction <add>, %20, %cst_18 [0] : vector<128x128xf32> to vector<128xf32>
      %22 = vector.shape_cast %21 : vector<128xf32> to vector<1x128xf32>
      %c0_19 = arith.constant 0 : index
      %c1 = arith.constant 1 : index
      %c0_20 = arith.constant 0 : index
      %23 = vector.load %arg5[%c0_19, %c1, %c0_20] : memref<1x2x128xf32, #tpu.memory_space<vmem>>, vector<1x1x128xf32>
      %24 = vector.shape_cast %23 : vector<1x1x128xf32> to vector<1x128xf32>
      %25 = vector.shape_cast %22 : vector<1x128xf32> to vector<1x1x128xf32>
      tpu.vector_store %arg5[%c0_19, %c1, %c0_20], %25 {strides = array<i32>} : memref<1x2x128xf32, #tpu.memory_space<vmem>>, vector<1x1x128xf32>,
    } else {
    }
    return
  }
  func.func @transform_0(%arg0: i32, %arg1: i32) -> (i32, i32) {
    %c0_i32 = arith.constant 0 : i32
    return %arg0, %arg1 : i32, i32
  }
  func.func @transform_1(%arg0: i32, %arg1: i32) -> (i32, i32) {
    %c0_i32 = arith.constant 0 : i32
    %c0_i32_0 = arith.constant 0 : i32
    return %arg1, %c0_i32 : i32, i32
  }
  func.func @transform_2(%arg0: i32, %arg1: i32) -> (i32, i32) {
    %c0_i32 = arith.constant 0 : i32
    %c0_i32_0 = arith.constant 0 : i32
    return %arg0, %c0_i32 : i32, i32
  }
  func.func @transform_3(%arg0: i32, %arg1: i32) -> (i32, i32, i32) {
    %c0_i32 = arith.constant 0 : i32
    %c0_i32_0 = arith.constant 0 : i32
    %c0_i32_1 = arith.constant 0 : i32
    return %arg0, %c0_i32, %c0_i32_0 : i32, i32, i32
  }
}

module attributes {stable_mosaic.version = 11 : i64} {
  func.func @_bn_relu_kernel(%arg0: i32, %arg1: memref<128x128xbf16, #tpu.memory_space<vmem>>, %arg2: memref<2x128xf32, #tpu.memory_space<vmem>>, %arg3: memref<128x128xbf16, #tpu.memory_space<vmem>>) attributes {dimension_semantics = [#tpu.dimension_semantics<parallel>], iteration_bounds = array<i64: 4>, scalar_prefetch = 0 : i64, scratch_operands = 0 : i64, tpu.core_type = #tpu.core_type<tc>, window_params = [{transform_indices = @transform_0, window_bounds = array<i64: 128, 128>}, {pipeline_mode = #tpu.pipeline_mode<synchronous>, transform_indices = @transform_1, window_bounds = array<i64: 2, 128>}, {transform_indices = @transform_2, window_bounds = array<i64: 128, 128>}]} {
    %c0 = arith.constant 0 : index
    %c0_0 = arith.constant 0 : index
    %0 = vector.load %arg1[%c0, %c0_0] : memref<128x128xbf16, #tpu.memory_space<vmem>>, vector<128x128xbf16>
    %1 = arith.extf %0 : vector<128x128xbf16> to vector<128x128xf32>
    %c0_1 = arith.constant 0 : index
    %c0_2 = arith.constant 0 : index
    %2 = vector.load %arg2[%c0_1, %c0_2] : memref<2x128xf32, #tpu.memory_space<vmem>>, vector<1x128xf32>
    %c1 = arith.constant 1 : index
    %c0_3 = arith.constant 0 : index
    %3 = vector.load %arg2[%c1, %c0_3] : memref<2x128xf32, #tpu.memory_space<vmem>>, vector<1x128xf32>
    %4 = vector.broadcast %2 : vector<1x128xf32> to vector<128x128xf32>
    %5 = arith.mulf %1, %4 : vector<128x128xf32>
    %6 = vector.broadcast %3 : vector<1x128xf32> to vector<128x128xf32>
    %7 = arith.addf %5, %6 : vector<128x128xf32>
    %cst = arith.constant 0.000000e+00 : f32
    %8 = vector.broadcast %cst : f32 to vector<128x128xf32>
    %9 = arith.maximumf %7, %8 : vector<128x128xf32>
    %10 = arith.truncf %9 : vector<128x128xf32> to vector<128x128xbf16>
    %c0_4 = arith.constant 0 : index
    %c0_5 = arith.constant 0 : index
    %11 = vector.load %arg3[%c0_4, %c0_5] : memref<128x128xbf16, #tpu.memory_space<vmem>>, vector<128x128xbf16>
    tpu.vector_store %arg3[%c0_4, %c0_5], %10 {strides = array<i32>} : memref<128x128xbf16, #tpu.memory_space<vmem>>, vector<128x128xbf16>,
    return
  }
  func.func @transform_0(%arg0: i32) -> (i32, i32) {
    %c0_i32 = arith.constant 0 : i32
    %c0_i32_0 = arith.constant 0 : i32
    return %arg0, %c0_i32 : i32, i32
  }
  func.func @transform_1(%arg0: i32) -> (i32, i32) {
    %c0_i32 = arith.constant 0 : i32
    %c0_i32_0 = arith.constant 0 : i32
    %c0_i32_1 = arith.constant 0 : i32
    return %c0_i32, %c0_i32_0 : i32, i32
  }
  func.func @transform_2(%arg0: i32) -> (i32, i32) {
    %c0_i32 = arith.constant 0 : i32
    %c0_i32_0 = arith.constant 0 : i32
    return %arg0, %c0_i32 : i32, i32
  }
}

</mosaic_0001>

<bundles_post_ra>
// kernel: squeeze.74
= control target key start
LH: loop header
LB: loop body
LE: loop exit
PB: predicated region body
PF: predicated region fallthrough
CT: control target
= control target key end

     0   :  { %s40_s8 = smov 104   ;;  %vm8_vm0 = vcmask 64512   ;;  %s41_s9 = smov 112   ;;  %s58_s0 = inlined_call_operand.vmem [shape: f32[32], index: 0, kind: input, shape index: {}]   ;;  %s59_s1 = inlined_call_operand.vmem [shape: f32[4,8], index: 1, kind: output, shape index: {}]  }
   0x1   :  { %v5_v0 = vld [vmem:[%s58_s0] sm:$0x1]  ;;  %s39_s0 = smov 120  }
   0x2   :  { %6 = vst [vmem:[#allocation1] sm:$0x1] %v5_v0 }
   0x9   :  { %v10_v1 = vld [vmem:[#allocation1] sm:$0x1]  }
   0xa   :  { %v22_v2 = vld [vmem:[#allocation1] sm:$0x1]   ;;  %11 = vrot.lane.b32.xlu0 %v10_v1, %s39_s0 }
   0xb   :  { %23 = vrot.lane.b32.xlu1 %v22_v2, %s40_s8  ;;  %v7_v3 = vld [vmem:[#allocation1] sm:$0x1]  }
   0xc   :  { %v16_v4 = vld [vmem:[#allocation1] sm:$0x1]   ;;  %9 = vst.msk [vmem:[#allocation0] sm:$0x1] %vm8_vm0, %v7_v3  }
   0xe   :  { %17 = vrot.lane.b32.xlu0 %v16_v4, %s41_s9 }
  0x7c   :  { %v12_v5 = vpop.permute.xlu0 %11  }
  0x7d   :  { %v24_v6 = vpop.permute.xlu1 %23   ;;  %15 = vst.msk [vmem:[#allocation0 + $0x1] sm:$0x1] %vm8_vm0, %v12_v5  }
  0x7e   :  { %27 = vst.msk [vmem:[#allocation0 + $0x3] sm:$0x1] %vm8_vm0, %v24_v6  }
  0x80   :  { %v18_v7 = vpop.permute.xlu0 %17  }
  0x81   :  { %21 = vst.msk [vmem:[#allocation0 + $0x2] sm:$0x1] %vm8_vm0, %v18_v7  }
  0x88   :  { %v32_v8 = vld [vmem:[#allocation0] sm:$0xf] }
  0x89   :  { %35 = vst [vmem:[%s59_s1] sm:$0xf] %v32_v8 }

// kernel: tile.18
= control target key start
LH: loop header
LB: loop body
LE: loop exit
PB: predicated region body
PF: predicated region fallthrough
CT: control target
= control target key end

     0   :  { %s22_s0 = inlined_call_operand.vmem [shape: f32[8], index: 0, kind: input, shape index: {}]   ;;  %s23_s1 = inlined_call_operand.vmem [shape: f32[4,8], index: 1, kind: output, shape index: {}]  }
   0x1   :  { %v4_v0 = vld [vmem:[%s22_s0] ss:$0 sm:$0xff] }
   0x2   :  { %5 = vst [vmem:[%s23_s1] sm:$0xf] %v4_v0 }

// kernel: tile.19
= control target key start
LH: loop header
LB: loop body
LE: loop exit
PB: predicated region body
PF: predicated region fallthrough
CT: control target
= control target key end

     0   :  { %vm8_vm0 = vcmask 64512   ;;  %s40_s8 = smov 8   ;;  %s41_s9 = smov 16   ;;  %vm14_vm1 = vcmask 261312   ;;  %vm20_vm2 = vcmask 195712   ;;  %vm26_vm3 = vcmask 130112   ;;  %s58_s0 = inlined_call_operand.vmem [shape: f32[4,8], index: 0, kind: input, shape index: {}]   ;;  %s59_s1 = inlined_call_operand.vmem [shape: f32[32], index: 1, kind: output, shape index: {}]  }
   0x1   :  { %v5_v0 = vld [vmem:[%s58_s0] sm:$0xf]  ;;  %s39_s0 = smov 24  }
   0x2   :  { %6 = vst [vmem:[#allocation1] sm:$0xf] %v5_v0 }
   0x9   :  { %v11_v1 = vld [vmem:[#allocation1 + $0x3] sm:$0x1]   ;;  %v23_v2 = vld [vmem:[#allocation1 + $0x1] sm:$0x1]   ;;  %v7_v3 = vld [vmem:[#allocation1] sm:$0x1]  }
   0xa   :  { %12 = vrot.lane.b32.xlu0 %v11_v1, %s39_s0  ;;  %24 = vrot.lane.b32.xlu1 %v23_v2, %s40_s8  ;;  %v17_v4 = vld [vmem:[#allocation1 + $0x2] sm:$0x1]   ;;  %9 = vst.msk [vmem:[#allocation0] sm:$0x1] %vm8_vm0, %v7_v3  }
   0xe   :  { %18 = vrot.lane.b32.xlu0 %v17_v4, %s41_s9 }
  0x7c   :  { %v13_v5 = vpop.permute.xlu0 %12   ;;  %v25_v6 = vpop.permute.xlu1 %24  }
  0x7d   :  { %15 = vst.msk [vmem:[#allocation0] sm:$0x1] %vm14_vm1, %v13_v5  }
  0x80   :  { %v19_v7 = vpop.permute.xlu0 %18  }
  0x81   :  { %21 = vst.msk [vmem:[#allocation0] sm:$0x1] %vm20_vm2, %v19_v7  }
  0x82   :  { %27 = vst.msk [vmem:[#allocation0] sm:$0x1] %vm26_vm3, %v25_v6  }
  0x89   :  { %v32_v8 = vld [vmem:[#allocation0] sm:$0x1] }
  0x8a   :  { %35 = vst [vmem:[%s59_s1] sm:$0x1] %v32_v8 }

// kernel: up_conv_forward.3
= control target key start
LH: loop header
LB: loop body
LE: loop exit
PB: predicated region body
PF: predicated region fallthrough
CT: control target
= control target key end

     0   :  { %s535_s9 = smov 0   ;;  %s575_s0 = inlined_call_operand.vmem [shape: bf16[512,128], index: 0, kind: input, shape index: {}, may-alias: {0,2}]   ;;  %s576_s1 = inlined_call_operand.vmem [shape: f32[2,128], index: 1, kind: input, shape index: {}]   ;;  %s577_s2 = inlined_call_operand.vmem [shape: bf16[512,128], index: 2, kind: output, shape index: {}, may-alias: {0,2}]  }
   0x1 LB: > { %s373_s10 = sadd.s32 4294967295, %s518_s9   ;;  %p377_p0 = scmp.ge.s32.totalorder %s518_s9, 1  ;;  %s518_s9 = sphi %s535_s9, %s12_s9  }
   0x2   : > { %p113_p1 = scmp.lt.s32.totalorder %s518_s9, 5 }
   0x4   : > { %p114_p2 = pnand %p377_p0, %p113_p1 }
   0x5   : > { %s378_s11 = sshll.u32 (!%p114_p2), %s373_s10, 4 }
   0x6   : > { %117 = sbr.rel (%p114_p2) target bundleno = 37 (0x25), region = 28  ;;  %p136_p3 = scmp.lt.s32.totalorder (!%p114_p2), %s378_s11, 63 }
   0xb   : > { %s579_s11 = smov (!%p136_p3, %s378_s11), 63  ;;  %v382_v16 = vld [vmem:[%s576_s1] ss:$0 sm:$0xff]  ;;  %v383_v29 = vld [vmem:[%s576_s1 + $0x1] ss:$0 sm:$0xff] }
   0xc   : > { %s379_s12 = sshll.u32 %s579_s11, 2 }
   0xd   : > { %s139_s15 = scalar_lea.vmem %s575_s0, %s379_s12  ;;  %s562_s22 = scalar_lea.vmem %s577_s2, %s379_s12 }
   0xe   : > { %v419_v0 = vld [vmem:[%s139_s15] sm:$0xff]   ;;  %v490_v1 = vld [vmem:[%s139_s15 + $0x8] sm:$0xff]   ;;  %v491_v2 = vld [vmem:[%s139_s15 + $0x10] sm:$0xff]  }
   0xf   : > { %v420_v3 = vunpack.c.l.bf16 %v419_v0  ;;  %v421_v4 = vunpack.c.h.bf16 %v419_v0  ;;  %v424_v5 = vunpack.c.l.bf16 %v490_v1  ;;  %v425_v6 = vunpack.c.h.bf16 %v490_v1  ;;  %v492_v7 = vld [vmem:[%s139_s15 + $0x18] sm:$0xff]   ;;  %v493_v8 = vld [vmem:[%s139_s15 + $0x20] sm:$0xff]   ;;  %v494_v9 = vld [vmem:[%s139_s15 + $0x28] sm:$0xff]  }
  0x10   : > { %v428_v10 = vunpack.c.l.bf16 %v491_v2  ;;  %v429_v11 = vunpack.c.h.bf16 %v491_v2  ;;  %v432_v12 = vunpack.c.l.bf16 %v492_v7  ;;  %v433_v13 = vunpack.c.h.bf16 %v492_v7  ;;  %v495_v14 = vld [vmem:[%s139_s15 + $0x30] sm:$0xff]   ;;  %v496_v15 = vld [vmem:[%s139_s15 + $0x38] sm:$0xff]  }
  0x11   : > { %v436_v17 = vunpack.c.l.bf16 %v493_v8  ;;  %v437_v18 = vunpack.c.h.bf16 %v493_v8  ;;  %v440_v19 = vunpack.c.l.bf16 %v494_v9  ;;  %v441_v20 = vunpack.c.h.bf16 %v494_v9 }
  0x12   : > { %v444_v21 = vunpack.c.l.bf16 %v495_v14  ;;  %v445_v22 = vunpack.c.h.bf16 %v495_v14  ;;  %v448_v23 = vunpack.c.l.bf16 %v496_v15  ;;  %v449_v24 = vunpack.c.h.bf16 %v496_v15 }
  0x13   : > { %v185_v25 = vmul.f32 %v420_v3, %v382_v16  ;;  %v186_v26 = vmul.f32 %v421_v4, %v382_v16  ;;  %v187_v27 = vmul.f32 %v424_v5, %v382_v16  ;;  %v188_v28 = vmul.f32 %v425_v6, %v382_v16 }
  0x14   : > { %v189_v30 = vmul.f32 %v428_v10, %v382_v16  ;;  %v190_v31 = vmul.f32 %v429_v11, %v382_v16  ;;  %v191_v32 = vmul.f32 %v432_v12, %v382_v16  ;;  %v192_v33 = vmul.f32 %v433_v13, %v382_v16 }
  0x15   : > { %v193_v34 = vmul.f32 %v436_v17, %v382_v16  ;;  %v194_v35 = vmul.f32 %v437_v18, %v382_v16  ;;  %v195_v36 = vmul.f32 %v440_v19, %v382_v16  ;;  %v196_v37 = vmul.f32 %v441_v20, %v382_v16 }
  0x16   : > { %v197_v38 = vmul.f32 %v444_v21, %v382_v16  ;;  %v198_v39 = vmul.f32 %v445_v22, %v382_v16  ;;  %v199_v40 = vmul.f32 %v448_v23, %v382_v16  ;;  %v200_v41 = vmul.f32 %v449_v24, %v382_v16 }
  0x17   : > { %v205_v42 = vadd.f32 %v383_v29, %v185_v25  ;;  %v206_v43 = vadd.f32 %v383_v29, %v186_v26  ;;  %v207_v44 = vadd.f32 %v383_v29, %v187_v27  ;;  %v208_v45 = vadd.f32 %v383_v29, %v188_v28 }
  0x18   : > { %v209_v46 = vadd.f32 %v383_v29, %v189_v30  ;;  %v210_v47 = vadd.f32 %v383_v29, %v190_v31  ;;  %v211_v48 = vadd.f32 %v383_v29, %v191_v32  ;;  %v212_v49 = vadd.f32 %v383_v29, %v192_v33 }
  0x19   : > { %v221_v50 = vmax.f32 %v205_v42, 0.0  ;;  %v222_v51 = vmax.f32 %v206_v43, 0.0  ;;  %v223_v52 = vmax.f32 %v207_v44, 0.0  ;;  %v224_v53 = vmax.f32 %v208_v45, 0.0 }
  0x1a   : > { %v225_v54 = vmax.f32 %v209_v46, 0.0  ;;  %v226_v55 = vmax.f32 %v210_v47, 0.0  ;;  %v227_v56 = vmax.f32 %v211_v48, 0.0  ;;  %v228_v57 = vmax.f32 %v212_v49, 0.0 }
  0x1b   : > { %v453_v58 = vpack.c.bf16 %v222_v51, %v221_v50  ;;  %v458_v59 = vpack.c.bf16 %v224_v53, %v223_v52  ;;  %v213_v60 = vadd.f32 %v383_v29, %v193_v34  ;;  %v214_v61 = vadd.f32 %v383_v29, %v194_v35 }
  0x1c   : > { %v463_v62 = vpack.c.bf16 %v226_v55, %v225_v54  ;;  %v468_v63 = vpack.c.bf16 %v228_v57, %v227_v56  ;;  %v215_v0 = vadd.f32 %v383_v29, %v195_v36  ;;  %v216_v1 = vadd.f32 %v383_v29, %v196_v37 }
  0x1d   : > { %454 = vst [vmem:[%s562_s22] sm:$0xff] %v453_v58   ;;  %497 = vst [vmem:[%s562_s22 + $0x8] sm:$0xff] %v458_v59   ;;  %v229_v2 = vmax.f32 %v213_v60, 0.0  ;;  %v230_v3 = vmax.f32 %v214_v61, 0.0  ;;  %v217_v4 = vadd.f32 %v383_v29, %v197_v38  ;;  %v218_v5 = vadd.f32 %v383_v29, %v198_v39 }
  0x1e   : > { %498 = vst [vmem:[%s562_s22 + $0x10] sm:$0xff] %v463_v62   ;;  %499 = vst [vmem:[%s562_s22 + $0x18] sm:$0xff] %v468_v63   ;;  %v231_v6 = vmax.f32 %v215_v0, 0.0  ;;  %v232_v7 = vmax.f32 %v216_v1, 0.0  ;;  %v219_v8 = vadd.f32 %v383_v29, %v199_v40  ;;  %v220_v9 = vadd.f32 %v383_v29, %v200_v41 }
  0x1f   : > { %v473_v10 = vpack.c.bf16 %v230_v3, %v229_v2  ;;  %v233_v11 = vmax.f32 %v217_v4, 0.0  ;;  %v234_v12 = vmax.f32 %v218_v5, 0.0 }
  0x20   : > { %v478_v13 = vpack.c.bf16 %v232_v7, %v231_v6  ;;  %v235_v14 = vmax.f32 %v219_v8, 0.0  ;;  %v236_v15 = vmax.f32 %v220_v9, 0.0 }
  0x21   : > { %500 = vst [vmem:[%s562_s22 + $0x20] sm:$0xff] %v473_v10   ;;  %v483_v16 = vpack.c.bf16 %v234_v12, %v233_v11 }
  0x22   : > { %501 = vst [vmem:[%s562_s22 + $0x28] sm:$0xff] %v478_v13   ;;  %v488_v17 = vpack.c.bf16 %v236_v15, %v235_v14 }
  0x23   : > { %502 = vst [vmem:[%s562_s22 + $0x30] sm:$0xff] %v483_v16  }
  0x24   : > { %503 = vst [vmem:[%s562_s22 + $0x38] sm:$0xff] %v488_v17  }
  0x25 PF: > { %s12_s9 = sadd.s32 1, %s518_s9  }
  0x26   : > { %p9_p4 = scmp.ge.s32.totalorder %s12_s9, 6  }
  0x28   :  { %11 = sbr.rel (!%p9_p4) target bundleno = 1 (0x1), region = 58 }

// kernel: up_conv_forward.2
= control target key start
LH: loop header
LB: loop body
LE: loop exit
PB: predicated region body
PF: predicated region fallthrough
CT: control target
= control target key end

     0   :  { %s1003_s12 = smov 0   ;;  %s1005_s13 = smov 0   ;;  %s1078_s0 = inlined_call_operand.vmem [shape: bf16[512,48], index: 0, kind: input, shape index: {}]   ;;  %s1079_s1 = inlined_call_operand.vmem [shape: bf16[48,128], index: 1, kind: input, shape index: {}]   ;;  %s1080_s2 = inlined_call_operand.vmem [shape: bf16[512,128], index: 2, kind: output, shape index: {0}]   ;;  %s1081_s3 = inlined_call_operand.vmem [shape: f32[4,2,128], index: 3, kind: output, shape index: {1}]  }
   0x1   :  { %s1007_s14 = smov 0  }
   0x2 LB: > { %s26_s15 = sadd.s32 1, %s977_s13  ;;  %p779_p0 = scmp.ge.s32.totalorder %s981_s14, 1  ;;  %s981_s14 = sphi %s1007_s14, %s14_s14   ;;  %s977_s13 = sphi %s1005_s13, %s1083_s13   ;;  %s973_s12 = sphi %s1003_s12, %s1082_s12  }
   0x3   : > { %p28_p1 = scmp.ge.s32.totalorder %s26_s15, 4  ;;  %p169_p2 = scmp.lt.s32.totalorder %s981_s14, 5 }
   0x5   : > { %s1085_s15 = smov (%p28_p1, %s26_s15), 0  ;;  %p170_p3 = pnand %p779_p0, %p169_p2 }
   0x6   : > { %s780_s18 = sshll.u32 (!%p170_p3), %s973_s12, 4  ;;  %p226_p5 = scmp.lt.s32.totalorder (!%p170_p3), %s973_s12, 3 }
   0x7   : > { %173 = sbr.rel (%p170_p3) target bundleno = 269 (0x10d), region = 28  ;;  %p206_p4 = scmp.lt.s32.totalorder (!%p170_p3), %s780_s18, 63 }
   0xc   : > { %v948_v0 = vld [vmem:[%s1079_s1 + $0x10] sm:$0xff]   ;;  %v949_v1 = vld [vmem:[%s1079_s1 + $0x8] sm:$0xff]   ;;  %s1087_s18 = smov (!%p206_p4, %s780_s18), 63  ;;  %v950_v2 = vld [vmem:[%s1079_s1] sm:$0xff]   ;;  %vm347_vm0 = vcmask 392192   ;;  %s1089_s12 = smov (!%p226_p5, %s973_s12), 3 }
   0xd   : > { %896 = vmatprep.subr.bf16.mxu0 %v948_v0  ;;  %918 = vmatprep.subr.bf16.mxu1 %v948_v0  ;;  %s781_s23 = sshll.u32 %s1087_s18, 2  ;;  %s784_s30 = sshll.u32 %s1089_s12, 1 }
   0xe   : > { %897 = vmatpush3.bf16.msra.mxu0 %v948_v0  ;;  %921 = vmatpush3.bf16.msra.mxu1 %v948_v0  ;;  %s212_s26 = scalar_lea.vmem %s1078_s0, %s781_s23  ;;  %s1054_s29 = scalar_lea.vmem %s1080_s2, %s781_s23 }
   0xf   : > { %898 = vmatprep.subr.bf16.mxu0 %v949_v1  ;;  %919 = vmatprep.subr.bf16.mxu1 %v949_v1  ;;  %v951_v3 = vld [vmem:[%s212_s26] sm:$0xff]   ;;  %v952_v4 = vld [vmem:[%s212_s26 + $0x8] sm:$0xff]   ;;  %v953_v5 = vld [vmem:[%s212_s26 + $0x10] sm:$0xff]   ;;  %s229_s6 = scalar_lea.vmem %s1081_s3, %s784_s30 }
  0x10   : > { %902 = vmatprep.mubr.msk.bf16.mxu0 %vm347_vm0, %v951_v3  ;;  %v955_v6 = vld [vmem:[%s212_s26 + $0x20] sm:$0xff]   ;;  %v956_v7 = vld [vmem:[%s212_s26 + $0x28] sm:$0xff]   ;;  %v957_v8 = vld [vmem:[%s212_s26 + $0x30] sm:$0xff]  }
  0x11   : > { %910 = vmatprep.mubr.msk.bf16.mxu1 %vm347_vm0, %v955_v6  ;;  %v954_v9 = vld [vmem:[%s212_s26 + $0x18] sm:$0xff]  }
  0x12   : > { %899 = vmatpush3.bf16.msra.mxu0 %v949_v1  ;;  %922 = vmatpush3.bf16.msra.mxu1 %v949_v1  ;;  %v958_v10 = vld [vmem:[%s212_s26 + $0x38] sm:$0xff]  }
  0x13   : > { %900 = vmatprep.subr.bf16.mxu0 %v950_v2  ;;  %920 = vmatprep.subr.bf16.mxu1 %v950_v2 }
  0x16   : > { %901 = vmatpush3.bf16.msra.mxu0 %v950_v2  ;;  %923 = vmatpush3.bf16.msra.mxu1 %v950_v2 }
  0x19   : > { %903 = vmatmul.mubr.msk.bf16.vlgmr.msra.gmra.mxu0 %vm347_vm0, %v952_v4  ;;  %911 = vmatmul.mubr.msk.bf16.vlgmr.msra.gmra.mxu1 %vm347_vm0, %v956_v7 }
  0x1a   : > { %906 = vmatprep.mubr.msk.bf16.mxu0 %vm347_vm0, %v953_v5  ;;  %914 = vmatprep.mubr.msk.bf16.mxu1 %vm347_vm0, %v957_v8 }
  0x21   : > { %907 = vmatmul.mubr.msk.bf16.gmra.mxu0 %vm347_vm0, %v954_v9  ;;  %915 = vmatmul.mubr.msk.bf16.gmra.mxu1 %vm347_vm0, %v958_v10 }
  0xd9   : > { %v904_v11 = vpop.f32.mrf.mxu0  ;;  %v912_v12 = vpop.f32.mrf.mxu1 }
  0xda   : > { %v624_v28 = vmul.f32 %v904_v11, %v904_v11  ;;  %v632_v62 = vmul.f32 %v912_v12, %v912_v12 }
  0xdb   : > { %v406_v13 = vpop.f32.mrf.mxu0  ;;  %v438_v14 = vpop.f32.mrf.mxu1 }
  0xdc   : > { %v622_v19 = vmul.f32 %v406_v13, %v406_v13  ;;  %v630_v56 = vmul.f32 %v438_v14, %v438_v14 }
  0xdd   : > { %v905_v15 = vpop.f32.mrf.mxu0  ;;  %v913_v16 = vpop.f32.mrf.mxu1 }
  0xde   : > { %v846_v17 = vpack.c.bf16 %v905_v15, %v904_v11  ;;  %v866_v18 = vpack.c.bf16 %v913_v16, %v912_v12  ;;  %v625_v33 = vmul.f32 %v905_v15, %v905_v15  ;;  %v633_v1 = vmul.f32 %v913_v16, %v913_v16 }
  0xdf   : > { %v409_v20 = vpop.f32.mrf.mxu0  ;;  %v441_v21 = vpop.f32.mrf.mxu1 }
  0xe0   : > { %878 = vst [vmem:[%s1054_s29 + $0x8] sm:$0xff] %v846_v17   ;;  %v841_v22 = vpack.c.bf16 %v409_v20, %v406_v13  ;;  %v600_v23 = vadd.f32 %v409_v20, %v406_v13  ;;  %v623_v24 = vmul.f32 %v409_v20, %v409_v20  ;;  %882 = vst [vmem:[%s1054_s29 + $0x28] sm:$0xff] %v866_v18  }
  0xe1   : > { %v861_v25 = vpack.c.bf16 %v441_v21, %v438_v14  ;;  %v908_v26 = vpop.f32.mrf.mxu0  ;;  %v916_v27 = vpop.f32.mrf.mxu1  ;;  %v631_v60 = vmul.f32 %v441_v21, %v441_v21 }
  0xe2   : > { %842 = vst [vmem:[%s1054_s29] sm:$0xff] %v841_v22   ;;  %v601_v29 = vadd.f32 %v904_v11, %v600_v23  ;;  %v638_v30 = vadd.f32 %v623_v24, %v622_v19  ;;  %v628_v50 = vmul.f32 %v908_v26, %v908_v26  ;;  %v636_v10 = vmul.f32 %v916_v27, %v916_v27 }
  0xe3   : > { %881 = vst [vmem:[%s1054_s29 + $0x20] sm:$0xff] %v861_v25   ;;  %v422_v31 = vpop.f32.mrf.mxu0  ;;  %v454_v32 = vpop.f32.mrf.mxu1 }
  0xe4   : > { %v639_v34 = vadd.f32 %v638_v30, %v624_v28  ;;  %v602_v35 = vadd.f32 %v905_v15, %v601_v29  ;;  %v626_v39 = vmul.f32 %v422_v31, %v422_v31  ;;  %v634_v5 = vmul.f32 %v454_v32, %v454_v32 }
  0xe5   : > { %v909_v36 = vpop.f32.mrf.mxu0  ;;  %v917_v37 = vpop.f32.mrf.mxu1 }
  0xe6   : > { %v603_v38 = vadd.f32 %v602_v35, %v422_v31  ;;  %v640_v40 = vadd.f32 %v639_v34, %v625_v33  ;;  %v856_v41 = vpack.c.bf16 %v909_v36, %v908_v26  ;;  %v876_v43 = vpack.c.bf16 %v917_v37, %v916_v27 }
  0xe7   : > { %v425_v42 = vpop.f32.mrf.mxu0  ;;  %v457_v44 = vpop.f32.mrf.mxu1  ;;  %v629_v53 = vmul.f32 %v909_v36, %v909_v36 }
  0xe8   : > { %v641_v45 = vadd.f32 %v640_v40, %v626_v39  ;;  %880 = vst [vmem:[%s1054_s29 + $0x18] sm:$0xff] %v856_v41   ;;  %v851_v46 = vpack.c.bf16 %v425_v42, %v422_v31  ;;  %v604_v47 = vadd.f32 %v603_v38, %v425_v42  ;;  %v627_v48 = vmul.f32 %v425_v42, %v425_v42 }
  0xe9   : > { %884 = vst [vmem:[%s1054_s29 + $0x38] sm:$0xff] %v876_v43   ;;  %v871_v49 = vpack.c.bf16 %v457_v44, %v454_v32  ;;  %v635_v9 = vmul.f32 %v457_v44, %v457_v44 }
  0xea   : > { %879 = vst [vmem:[%s1054_s29 + $0x10] sm:$0xff] %v851_v46   ;;  %v605_v51 = vadd.f32 %v908_v26, %v604_v47  ;;  %v642_v52 = vadd.f32 %v641_v45, %v627_v48 }
  0xeb   : > { %883 = vst [vmem:[%s1054_s29 + $0x30] sm:$0xff] %v871_v49  }
  0xec   : > { %v606_v54 = vadd.f32 %v909_v36, %v605_v51  ;;  %v643_v55 = vadd.f32 %v642_v52, %v628_v50 }
  0xee   : > { %v644_v57 = vadd.f32 %v643_v55, %v629_v53  ;;  %v607_v58 = vadd.f32 %v606_v54, %v438_v14  ;;  %v637_v14 = vmul.f32 %v917_v37, %v917_v37 }
  0xf0   : > { %v608_v59 = vadd.f32 %v607_v58, %v441_v21  ;;  %v645_v61 = vadd.f32 %v644_v57, %v630_v56 }
  0xf2   : > { %v609_v63 = vadd.f32 %v912_v12, %v608_v59  ;;  %v646_v0 = vadd.f32 %v645_v61, %v631_v60 }
  0xf4   : > { %v647_v2 = vadd.f32 %v646_v0, %v632_v62  ;;  %v610_v3 = vadd.f32 %v913_v16, %v609_v63 }
  0xf6   : > { %v611_v4 = vadd.f32 %v610_v3, %v454_v32  ;;  %v648_v6 = vadd.f32 %v647_v2, %v633_v1 }
  0xf8   : > { %v649_v7 = vadd.f32 %v648_v6, %v634_v5  ;;  %v612_v8 = vadd.f32 %v611_v4, %v457_v44 }
  0xfa   : > { %v613_v11 = vadd.f32 %v916_v27, %v612_v8  ;;  %v650_v13 = vadd.f32 %v649_v7, %v635_v9 }
  0xfc   : > { %v614_v15 = vadd.f32 %v917_v37, %v613_v11  ;;  %v651_v17 = vadd.f32 %v650_v13, %v636_v10 }
  0xfe   : > { %v615_v18 = vrot.slane %v614_v15, 4  ;;  %v652_v12 = vadd.f32 %v651_v17, %v637_v14 }
 0x100   : > { %v616_v19 = vadd.f32 %v615_v18, %v614_v15  ;;  %v653_v20 = vrot.slane %v652_v12, 4 }
 0x102   : > { %v617_v16 = vrot.slane %v616_v19, 2  ;;  %v654_v21 = vadd.f32 %v653_v20, %v652_v12 }
 0x104   : > { %v618_v22 = vadd.f32 %v617_v16, %v616_v19  ;;  %v655_v23 = vrot.slane %v654_v21, 2 }
 0x106   : > { %v619_v24 = vrot.slane %v618_v22, 1  ;;  %v656_v25 = vadd.f32 %v655_v23, %v654_v21 }
 0x108   : > { %v620_v26 = vadd.f32 %v619_v24, %v618_v22  ;;  %v657_v27 = vrot.slane %v656_v25, 1 }
 0x10a   : > { %621 = vst [vmem:[%s229_s6] sm:$0x1] %v620_v26  ;;  %v658_v28 = vadd.f32 %v657_v27, %v656_v25 }
 0x10c   : > { %659 = vst [vmem:[%s229_s6 + $0x1] sm:$0x1] %v658_v28 }
 0x10d PF: > { %s14_s14 = sadd.s32 1, %s981_s14   ;;  %s1082_s12 = smov %s977_s13 }
 0x10e   : > { %p11_p6 = scmp.ge.s32.totalorder %s14_s14, 6   ;;  %s1083_s13 = smov %s1085_s15 }
 0x110   :  { %13 = sbr.rel (!%p11_p6) target bundleno = 2 (0x2), region = 81 }

</bundles_post_ra>
